<compile_context>
chip_gen: v6e
topology: v6e:2x2x1
jax: 0.10.0
libtpu: 0.0.40
codegen_flags: <defaults>
</compile_context>

<pallas_src>
import functools

import jax
import jax.numpy as jnp
from jax import lax
from jax.experimental import pallas as pl
from jax.experimental.pallas import tpu as pltpu


# 48 MiB scoped VMEM: safely below v7x's 64 MiB physical VMEM and well within
# v5e/v6e's 128 MiB, while still allowing large double-buffered tiles.
_VMEM_LIMIT_BYTES = 48 * 1024 * 1024


def _round_up(a, b):
    return (a + b - 1) // b * b


def _choose_tile_m(m):
    """Pick an M tile that gives a multi-step grid with big (>=128) tiles."""
    for tm in (512, 256, 128):
        if m >= 2 * tm:
            return tm
    return min(_round_up(m, 8), 512)


# ----------------------------------------------------------------------------
# Pallas kernel 1: fused  out = [relu]( sum_i (X_i @ W_i) + bias [+ residual] )
# (BN scale is pre-folded into W_i; used for conv1 and for conv3+shortcut.)
# ----------------------------------------------------------------------------
def _gemm_bias_act_kernel(*refs, n_mats, apply_relu, has_residual):
    xs = refs[:n_mats]
    ws = refs[n_mats:2 * n_mats]
    b_ref = refs[2 * n_mats]
    idx = 2 * n_mats + 1
    r_ref = None
    if has_residual:
        r_ref = refs[idx]
        idx += 1
    o_ref = refs[idx]

    acc = jnp.dot(xs[0][...], ws[0][...], preferred_element_type=jnp.float32)
    for i in range(1, n_mats):
        acc = acc + jnp.dot(xs[i][...], ws[i][...],
                            preferred_element_type=jnp.float32)
    out = acc + b_ref[...]
    if r_ref is not None:
        out = out + r_ref[...].astype(jnp.float32)
    if apply_relu:
        out = jnp.maximum(out, 0.0)
    o_ref[...] = out.astype(o_ref.dtype)


def fused_gemm(xs, ws, bias, *, relu, residual=None,
               out_dtype=jnp.float32, compute_dtype=jnp.bfloat16):
    """xs: list of (M, K_i), ws: list of (K_i, N), bias: (N,), residual: (M, N)."""
    M = xs[0].shape[0]
    N = ws[0].shape[1]
    n_mats = len(xs)

    xs = [x.astype(compute_dtype) for x in xs]
    ws = [w.astype(compute_dtype) for w in ws]
    if residual is not None:
        residual = residual.astype(compute_dtype)
    bias = bias.reshape(1, N).astype(jnp.float32)

    # M tiling: pad M up to a tile multiple (pl.cdiv-style grid, no degenerate
    # whole-M fallback); padded rows are sliced off afterwards.
    TM = _choose_tile_m(M)
    Mp = _round_up(M, TM)
    if Mp != M:
        pad = ((0, Mp - M), (0, 0))
        xs = [jnp.pad(x, pad) for x in xs]
        if residual is not None:
            residual = jnp.pad(residual, pad)

    # N tiling bounds VMEM for wide output channels (e.g. 2048 late in ResNet).
    TN = 256 if N % 256 == 0 else (128 if N % 128 == 0 else N)
    grid = (Mp // TM, N // TN)

    in_specs = []
    args = []
    for x in xs:
        in_specs.append(pl.BlockSpec((TM, x.shape[1]), lambda i, j: (i, 0)))
        args.append(x)
    for w in ws:
        in_specs.append(pl.BlockSpec((w.shape[0], TN), lambda i, j: (0, j)))
        args.append(w)
    in_specs.append(pl.BlockSpec((1, TN), lambda i, j: (0, j)))
    args.append(bias)
    if residual is not None:
        in_specs.append(pl.BlockSpec((TM, TN), lambda i, j: (i, j)))
        args.append(residual)

    kernel = functools.partial(
        _gemm_bias_act_kernel, n_mats=n_mats, apply_relu=relu,
        has_residual=residual is not None)

    out = pl.pallas_call(
        kernel,
        out_shape=jax.ShapeDtypeStruct((Mp, N), out_dtype),
        grid_spec=pltpu.PrefetchScalarGridSpec(
            num_scalar_prefetch=0,
            grid=grid,
            in_specs=in_specs,
            out_specs=pl.BlockSpec((TM, TN), lambda i, j: (i, j)),
        ),
        compiler_params=pltpu.CompilerParams(
            dimension_semantics=("parallel", "parallel"),
            vmem_limit_bytes=_VMEM_LIMIT_BYTES),
    )(*args)
    if Mp != M:
        out = out[:M]
    return out


# ----------------------------------------------------------------------------
# Pallas kernel 2: 3x3 conv (pad=1, stride) + BN (folded) + ReLU.
# Grid over batch; the 9 taps are accumulated *inside* the kernel (no im2col
# buffer in HBM). Input arrives spatially padded; the BN scale is pre-folded
# into the weights.
# ----------------------------------------------------------------------------
def _conv3x3_kernel(x_ref, w_ref, b_ref, o_ref, *, stride, Ho, Wo):
    C = x_ref.shape[-1]
    Cout = w_ref.shape[-1]
    x = x_ref[0]                                   # (H+2, W+2, C)
    acc = jnp.zeros((Ho * Wo, Cout), jnp.float32)
    for kh in range(3):
        for kw in range(3):
            win = lax.slice(
                x,
                (kh, kw, 0),
                (kh + (Ho - 1) * stride + 1, kw + (Wo - 1) * stride + 1, C),
                (stride, stride, 1),
            )                                      # (Ho, Wo, C)
            acc = acc + jnp.dot(win.reshape(Ho * Wo, C), w_ref[kh * 3 + kw],
                                preferred_element_type=jnp.float32)
    out = jnp.maximum(acc + b_ref[...], 0.0)
    o_ref[0] = out.reshape(Ho, Wo, Cout).astype(o_ref.dtype)


def conv3x3_bn_relu(x_nhwc, w_oihw, scale, bias, *, stride,
                    out_dtype=jnp.bfloat16, compute_dtype=jnp.bfloat16):
    N, H, W, C = x_nhwc.shape
    Cout = w_oihw.shape[0]
    Ho = (H + 2 - 3) // stride + 1
    Wo = (W + 2 - 3) // stride + 1

    # One 1x padded copy of the activations (instead of a 9x im2col blow-up).
    xp = jnp.pad(x_nhwc.astype(compute_dtype), ((0, 0), (1, 1), (1, 1), (0, 0)))
    # (Cout, Cin, 3, 3) -> (3, 3, Cin, Cout), fold BN scale into Cout, bf16.
    w = jnp.transpose(w_oihw, (2, 3, 1, 0)) * scale[None, None, None, :]
    w = w.reshape(9, C, Cout).astype(compute_dtype)
    b = bias.reshape(1, Cout).astype(jnp.float32)

    kernel = functools.partial(_conv3x3_kernel, stride=stride, Ho=Ho, Wo=Wo)
    return pl.pallas_call(
        kernel,
        out_shape=jax.ShapeDtypeStruct((N, Ho, Wo, Cout), out_dtype),
        grid_spec=pltpu.PrefetchScalarGridSpec(
            num_scalar_prefetch=0,
            grid=(N,),
            in_specs=[
                pl.BlockSpec((1, H + 2, W + 2, C), lambda n: (n, 0, 0, 0)),
                pl.BlockSpec((9, C, Cout), lambda n: (0, 0, 0)),
                pl.BlockSpec((1, Cout), lambda n: (0, 0)),
            ],
            out_specs=pl.BlockSpec((1, Ho, Wo, Cout), lambda n: (n, 0, 0, 0)),
        ),
        compiler_params=pltpu.CompilerParams(
            dimension_semantics=("parallel",),
            vmem_limit_bytes=_VMEM_LIMIT_BYTES),
    )(xp, w, b)


def fold_bn(gamma, beta, mean, var, eps=1e-5):
    scale = gamma / jnp.sqrt(var + eps)
    bias = beta - mean * scale
    return scale, bias


# ----------------------------------------------------------------------------
# Bottleneck block parameters + forward
# ----------------------------------------------------------------------------
def init_bottleneck_params(key, in_planes, planes, stride):
    expansion = 4
    out_planes = expansion * planes
    ks = jax.random.split(key, 24)       # 20 needed (shortcut case); headroom
    k = iter(ks)

    def conv_w(kk, cout, cin, kh, kw):
        return jax.random.normal(kk, (cout, cin, kh, kw), jnp.float32) * 0.1

    def bn_p(k0, k1, k2, k3, c):
        gamma = 0.5 + jax.random.uniform(k0, (c,), jnp.float32)
        beta = 0.1 * jax.random.normal(k1, (c,), jnp.float32)
        mean = 0.1 * jax.random.normal(k2, (c,), jnp.float32)
        var = 0.5 + jax.random.uniform(k3, (c,), jnp.float32)
        return gamma, beta, mean, var

    params = {
        "conv1": conv_w(next(k), planes, in_planes, 1, 1),
        "bn1": bn_p(next(k), next(k), next(k), next(k), planes),
        "conv2": conv_w(next(k), planes, planes, 3, 3),
        "bn2": bn_p(next(k), next(k), next(k), next(k), planes),
        "conv3": conv_w(next(k), out_planes, planes, 1, 1),
        "bn3": bn_p(next(k), next(k), next(k), next(k), out_planes),
    }
    params["has_shortcut"] = (stride != 1) or (in_planes != out_planes)
    if params["has_shortcut"]:
        params["conv_sc"] = conv_w(next(k), out_planes, in_planes, 1, 1)
        params["bn_sc"] = bn_p(next(k), next(k), next(k), next(k), out_planes)
    params["stride"] = stride
    return params


def bottleneck_forward(params, x_nchw):
    stride = params["stride"]
    x = jnp.transpose(x_nchw, (0, 2, 3, 1)).astype(jnp.float32)   # NHWC
    N, H, W, Cin = x.shape
    planes = params["conv1"].shape[0]
    out_planes = params["conv3"].shape[0]

    # --- conv1 (1x1) + bn1 + relu  (scale folded into weights) ---------------
    s1, b1 = fold_bn(*params["bn1"])
    w1 = params["conv1"][:, :, 0, 0].T * s1[None, :]              # (Cin, planes)
    out1 = fused_gemm([x.reshape(N * H * W, Cin)], [w1], b1, relu=True,
                      out_dtype=jnp.bfloat16)
    out1 = out1.reshape(N, H, W, planes)

    # --- conv2 (3x3, stride, pad=1) + bn2 + relu: in-kernel 9-tap accum ------
    s2, b2 = fold_bn(*params["bn2"])
    out2 = conv3x3_bn_relu(out1, params["conv2"], s2, b2, stride=stride)
    _, Ho, Wo, _ = out2.shape
    out2_2d = out2.reshape(N * Ho * Wo, planes)

    # --- conv3 (1x1) + bn3 + shortcut + relu, fused in ONE kernel ------------
    s3, b3 = fold_bn(*params["bn3"])
    w3 = params["conv3"][:, :, 0, 0].T * s3[None, :]              # (planes, out)
    if params["has_shortcut"]:
        ssc, bsc = fold_bn(*params["bn_sc"])
        wsc = params["conv_sc"][:, :, 0, 0].T * ssc[None, :]      # (Cin, out)
        # TODO(synk): the stride subsample below is a single XLA strided slice;
        # it could be folded into the kernel's DMA for a minor extra saving.
        x_s = x[:, ::stride, ::stride, :].reshape(N * Ho * Wo, Cin)
        out3 = fused_gemm([out2_2d, x_s], [w3, wsc], b3 + bsc, relu=True,
                          out_dtype=jnp.float32)
    else:
        resid = x.reshape(N * Ho * Wo, out_planes)
        out3 = fused_gemm([out2_2d], [w3], b3, relu=True, residual=resid,
                          out_dtype=jnp.float32)

    out = out3.reshape(N, Ho, Wo, out_planes)
    return jnp.transpose(out, (0, 3, 1, 2))                       # back to NCHW


# ----------------------------------------------------------------------------
# Pure-JAX reference (f32, eval-mode BN) for correctness check
# ----------------------------------------------------------------------------
def bottleneck_reference(params, x_nchw):
    stride = params["stride"]
    x = x_nchw.astype(jnp.float32)

    def conv(x, w, stride=1, pad=0):
        return lax.conv_general_dilated(
            x, w, window_strides=(stride, stride),
            padding=((pad, pad), (pad, pad)),
            dimension_numbers=("NCHW", "OIHW", "NCHW"))

    def bn(x, p):
        g, b, m, v = p
        s = g / jnp.sqrt(v + 1e-5)
        return x * s[None, :, None, None] + (b - m * s)[None, :, None, None]

    out = jax.nn.relu(bn(conv(x, params["conv1"]), params["bn1"]))
    out = jax.nn.relu(bn(conv(out, params["conv2"], stride=stride, pad=1), params["bn2"]))
    out = bn(conv(out, params["conv3"]), params["bn3"])
    if params["has_shortcut"]:
        sc = bn(conv(x, params["conv_sc"], stride=stride), params["bn_sc"])
    else:
        sc = x
    return jax.nn.relu(out + sc)


if __name__ == "__main__":
    key = jax.random.PRNGKey(0)
    kx1, kp1, kx2, kp2 = jax.random.split(key, 4)

    # Tolerances are set for bf16 MXU inputs / bf16 inter-stage activations
    # (f32 accumulation): expected deviation from the pure-f32 reference is a
    # few percent at most.
    ATOL, RTOL = 7.5e-2, 5e-2

    # --- Test 1: projection shortcut (stride=2, channel expansion) ----------
    in_planes, planes, stride = 8, 4, 2
    x1 = jax.random.normal(kx1, (2, in_planes, 16, 16), jnp.float32)
    p1 = init_bottleneck_params(kp1, in_planes, planes, stride)
    y1 = jax.block_until_ready(bottleneck_forward(p1, x1))
    r1 = jax.block_until_ready(bottleneck_reference(p1, x1))
    assert y1.shape == r1.shape == (2, 4 * planes, 8, 8), y1.shape
    assert jnp.allclose(y1, r1, atol=ATOL, rtol=RTOL), float(
        jnp.max(jnp.abs(y1 - r1)))

    # --- Test 2: identity shortcut (stride=1, in_planes == 4*planes) --------
    in_planes, planes, stride = 16, 4, 1
    x2 = jax.random.normal(kx2, (2, in_planes, 16, 16), jnp.float32)
    p2 = init_bottleneck_params(kp2, in_planes, planes, stride)
    y2 = jax.block_until_ready(bottleneck_forward(p2, x2))
    r2 = jax.block_until_ready(bottleneck_reference(p2, x2))
    assert y2.shape == r2.shape == (2, 4 * planes, 16, 16), y2.shape
    assert jnp.allclose(y2, r2, atol=ATOL, rtol=RTOL), float(
        jnp.max(jnp.abs(y2 - r2)))

    print("KERNEL_OK")
</pallas_src>

<mosaic_0001>
module attributes {stable_mosaic.version = 11 : i64} {
  func.func @_gemm_bias_act_kernel(%arg0: i32, %arg1: i32, %arg2: memref<256x8xbf16, #tpu.memory_space<vmem>>, %arg3: memref<8x4xbf16, #tpu.memory_space<vmem>>, %arg4: memref<1x4xf32, #tpu.memory_space<vmem>>, %arg5: memref<256x4xbf16, #tpu.memory_space<vmem>>) attributes {dimension_semantics = [#tpu.dimension_semantics<parallel>, #tpu.dimension_semantics<parallel>], iteration_bounds = array<i64: 2, 1>, scalar_prefetch = 0 : i64, scratch_operands = 0 : i64, tpu.core_type = #tpu.core_type<tc>, window_params = [{transform_indices = @transform_0, window_bounds = array<i64: 256, 8>}, {transform_indices = @transform_1, window_bounds = array<i64: 8, 4>}, {transform_indices = @transform_2, window_bounds = array<i64: 1, 4>}, {transform_indices = @transform_3, window_bounds = array<i64: 256, 4>}]} {
    %c0 = arith.constant 0 : index
    %c0_0 = arith.constant 0 : index
    %0 = vector.load %arg2[%c0, %c0_0] : memref<256x8xbf16, #tpu.memory_space<vmem>>, vector<256x8xbf16>
    %c0_1 = arith.constant 0 : index
    %c0_2 = arith.constant 0 : index
    %1 = vector.load %arg3[%c0_1, %c0_2] : memref<8x4xbf16, #tpu.memory_space<vmem>>, vector<8x4xbf16>
    %cst = arith.constant dense<0.000000e+00> : vector<256x4xf32>
    %2 = tpu.matmul %0, %1, %cst {dimension_numbers = #tpu.dot_dimension_numbers<[1], [0], [0], [1], [0, 0, 1, 1], [], []>} : vector<256x8xbf16>, vector<8x4xbf16>, vector<256x4xf32> -> vector<256x4xf32>
    %c0_3 = arith.constant 0 : index
    %c0_4 = arith.constant 0 : index
    %3 = vector.load %arg4[%c0_3, %c0_4] : memref<1x4xf32, #tpu.memory_space<vmem>>, vector<1x4xf32>
    %4 = vector.broadcast %3 : vector<1x4xf32> to vector<256x4xf32>
    %5 = arith.addf %2, %4 : vector<256x4xf32>
    %cst_5 = arith.constant 0.000000e+00 : f32
    %6 = vector.broadcast %cst_5 : f32 to vector<256x4xf32>
    %7 = arith.maximumf %5, %6 : vector<256x4xf32>
    %8 = arith.truncf %7 : vector<256x4xf32> to vector<256x4xbf16>
    %c0_6 = arith.constant 0 : index
    %c0_7 = arith.constant 0 : index
    %9 = vector.load %arg5[%c0_6, %c0_7] : memref<256x4xbf16, #tpu.memory_space<vmem>>, vector<256x4xbf16>
    tpu.vector_store %arg5[%c0_6, %c0_7], %8 {strides = array<i32>} : memref<256x4xbf16, #tpu.memory_space<vmem>>, vector<256x4xbf16>,
    return
  }
  func.func @transform_0(%arg0: i32, %arg1: i32) -> (i32, i32) {
    %c0_i32 = arith.constant 0 : i32
    %c0_i32_0 = arith.constant 0 : i32
    return %arg0, %c0_i32 : i32, i32
  }
  func.func @transform_1(%arg0: i32, %arg1: i32) -> (i32, i32) {
    %c0_i32 = arith.constant 0 : i32
    %c0_i32_0 = arith.constant 0 : i32
    return %c0_i32, %arg1 : i32, i32
  }
  func.func @transform_2(%arg0: i32, %arg1: i32) -> (i32, i32) {
    %c0_i32 = arith.constant 0 : i32
    %c0_i32_0 = arith.constant 0 : i32
    return %c0_i32, %arg1 : i32, i32
  }
  func.func @transform_3(%arg0: i32, %arg1: i32) -> (i32, i32) {
    %c0_i32 = arith.constant 0 : i32
    return %arg0, %arg1 : i32, i32
  }
}

</mosaic_0001>

<bundles_post_ra>
// kernel: tpu_custom_call.1
= control target key start
LH: loop header
LB: loop body
LE: loop exit
PB: predicated region body
PF: predicated region fallthrough
CT: control target
= control target key end

     0   :  { %s1104_s12 = smov 0   ;;  %s1106_s13 = smov 0   ;;  %s1284_s0 = inlined_call_operand.vmem [shape: bf16[512,8], index: 0, kind: input, shape index: {}]   ;;  %s1285_s1 = inlined_call_operand.vmem [shape: bf16[8,4], index: 1, kind: input, shape index: {}]   ;;  %s1286_s2 = inlined_call_operand.vmem [shape: f32[1,4], index: 2, kind: input, shape index: {}]   ;;  %s1287_s3 = inlined_call_operand.vmem [shape: bf16[512,4], index: 3, kind: output, shape index: {}]  }
   0x1   :  { %s1108_s14 = smov 0  }
   0x2 LB: > { %s25_s15 = sadd.s32 1, %s1078_s13  ;;  %p861_p0 = scmp.ge.s32.totalorder %s1082_s14, 1  ;;  %s1082_s14 = sphi %s1108_s14, %s13_s14   ;;  %s1078_s13 = sphi %s1106_s13, %s1289_s13   ;;  %s1074_s12 = sphi %s1104_s12, %s1288_s12  }
   0x3   : > { %p27_p1 = scmp.ge.s32.totalorder %s25_s15, 2  ;;  %p169_p2 = scmp.lt.s32.totalorder %s1082_s14, 3 }
   0x5   : > { %s1291_s15 = smov (%p27_p1, %s25_s15), 0  ;;  %p170_p3 = pnand %p861_p0, %p169_p2 }
   0x6   : > { %s862_s18 = sshll.u32 (!%p170_p3), %s1074_s12, 5 }
   0x7   : > { %173 = sbr.rel (%p170_p3) target bundleno = 248 (0xf8), region = 32  ;;  %p204_p4 = scmp.lt.s32.totalorder (!%p170_p3), %s862_s18, 63 }
   0xc   : > { %v258_v0 = vld [vmem:[%s1285_s1] sm:$0xf]  ;;  %vm395_vm0 = vcmask 1043456   ;;  %s1293_s18 = smov (!%p204_p4, %s862_s18), 63  ;;  %vm346_vm1 = vcmask 64512   ;;  %vm720_vm2 = vcmask 27648  }
   0xd   : > { %1018 = vmatprep.subr.msk.bf16.mxu0 %vm395_vm0, %v258_v0  ;;  %1019 = vmatprep.subr.msk.bf16.mxu1 %vm395_vm0, %v258_v0  ;;  %v397_v1 = vsel %vm395_vm0, %v258_v0, 0  ;;  %s863_s19 = sshll.u32 %s1293_s18, 2  ;;  %v1170_v18 = vld [vmem:[%s1286_s2] ss:$0 sm:$0xff] }
   0xe   : > { %983 = vmatpush3.bf16.msra.mxu0 %v397_v1  ;;  %1017 = vmatpush3.bf16.msra.mxu1 %v397_v1  ;;  %s1133_s22 = scalar_lea.vmem %s1284_s0, %s863_s19  ;;  %s1180_s27 = scalar_lea.vmem %s1287_s3, %s863_s19 }
   0xf   : > { %v1044_v2 = vld [vmem:[%s1133_s22] sm:$0xff]   ;;  %v1046_v4 = vld [vmem:[%s1133_s22 + $0x8] sm:$0xff]   ;;  %v1048_v6 = vld [vmem:[%s1133_s22 + $0x10] sm:$0xff]  }
  0x10   : > { %v1045_v3 = vld [vmem:[%s1133_s22 + $0x40] sm:$0xff]   ;;  %984 = vmatprep.mubr.msk.bf16.mxu0 %vm346_vm1, %v1044_v2  ;;  %v1047_v5 = vld [vmem:[%s1133_s22 + $0x48] sm:$0xff]   ;;  %v1049_v7 = vld [vmem:[%s1133_s22 + $0x50] sm:$0xff]  }
  0x11   : > { %1000 = vmatprep.mubr.msk.bf16.mxu1 %vm346_vm1, %v1045_v3  ;;  %985 = vmatmul.mubr.msk.bf16.vlgmr.msra.gmra.mxu0 %vm346_vm1, %v1046_v4  ;;  %v1050_v8 = vld [vmem:[%s1133_s22 + $0x18] sm:$0xff]   ;;  %v1052_v10 = vld [vmem:[%s1133_s22 + $0x20] sm:$0xff]   ;;  %v1054_v12 = vld [vmem:[%s1133_s22 + $0x28] sm:$0xff]  }
  0x12   : > { %1001 = vmatmul.mubr.msk.bf16.vlgmr.msra.gmra.mxu1 %vm346_vm1, %v1047_v5  ;;  %988 = vmatprep.mubr.msk.bf16.mxu0 %vm346_vm1, %v1048_v6  ;;  %v1051_v9 = vld [vmem:[%s1133_s22 + $0x58] sm:$0xff]   ;;  %v1053_v11 = vld [vmem:[%s1133_s22 + $0x60] sm:$0xff]   ;;  %v1055_v13 = vld [vmem:[%s1133_s22 + $0x68] sm:$0xff]  }
  0x13   : > { %1004 = vmatprep.mubr.msk.bf16.mxu1 %vm346_vm1, %v1049_v7  ;;  %v1056_v14 = vld [vmem:[%s1133_s22 + $0x30] sm:$0xff]   ;;  %v1058_v16 = vld [vmem:[%s1133_s22 + $0x38] sm:$0xff]  }
  0x14   : > { %v1057_v15 = vld [vmem:[%s1133_s22 + $0x70] sm:$0xff]   ;;  %v1059_v17 = vld [vmem:[%s1133_s22 + $0x78] sm:$0xff]  }
  0x19   : > { %989 = vmatmul.mubr.msk.bf16.gmra.mxu0 %vm346_vm1, %v1050_v8 }
  0x1a   : > { %1005 = vmatmul.mubr.msk.bf16.gmra.mxu1 %vm346_vm1, %v1051_v9  ;;  %992 = vmatprep.mubr.msk.bf16.mxu0 %vm346_vm1, %v1052_v10 }
  0x1b   : > { %1008 = vmatprep.mubr.msk.bf16.mxu1 %vm346_vm1, %v1053_v11 }
  0x21   : > { %993 = vmatmul.mubr.msk.bf16.gmra.mxu0 %vm346_vm1, %v1054_v12 }
  0x22   : > { %1009 = vmatmul.mubr.msk.bf16.gmra.mxu1 %vm346_vm1, %v1055_v13  ;;  %996 = vmatprep.mubr.msk.bf16.mxu0 %vm346_vm1, %v1056_v14 }
  0x23   : > { %1012 = vmatprep.mubr.msk.bf16.mxu1 %vm346_vm1, %v1057_v15 }
  0x29   : > { %997 = vmatmul.mubr.msk.bf16.gmra.mxu0 %vm346_vm1, %v1058_v16 }
  0x2a   : > { %1013 = vmatmul.mubr.msk.bf16.gmra.mxu1 %vm346_vm1, %v1059_v17 }
  0xd1   : > { %v986_v19 = vpop.f32.mrf.mxu0 }
  0xd2   : > { %v442_v20 = vadd.f32 %v986_v19, %v1170_v18  ;;  %v1002_v21 = vpop.f32.mrf.mxu1 }
  0xd3   : > { %v506_v22 = vadd.f32 %v1002_v21, %v1170_v18  ;;  %v433_v23 = vpop.f32.mrf.mxu0 }
  0xd4   : > { %v562_v24 = vmax.f32 %v442_v20, 0.0  ;;  %v434_v25 = vadd.f32 %v1170_v18, %v433_v23  ;;  %v497_v26 = vpop.f32.mrf.mxu1 }
  0xd5   : > { %v578_v27 = vmax.f32 %v506_v22, 0.0  ;;  %v498_v28 = vadd.f32 %v1170_v18, %v497_v26  ;;  %v987_v29 = vpop.f32.mrf.mxu0 }
  0xd6   : > { %v935_v30 = vpack.c.bf16 %v562_v24, %v562_v24  ;;  %v560_v31 = vmax.f32 %v434_v25, 0.0  ;;  %v445_v32 = vadd.f32 %v987_v29, %v1170_v18  ;;  %v1003_v33 = vpop.f32.mrf.mxu1 }
  0xd7   : > { %v951_v34 = vpack.c.bf16 %v578_v27, %v578_v27  ;;  %v576_v35 = vmax.f32 %v498_v28, 0.0  ;;  %v509_v36 = vadd.f32 %v1003_v33, %v1170_v18  ;;  %v436_v37 = vpop.f32.mrf.mxu0 }
  0xd8   : > { %723 = vst.msk [vmem:[%s1180_s27 + $0x8] sm:$0xf] %vm720_vm2, %v935_v30  ;;  %v933_v38 = vpack.c.bf16 %v560_v31, %v560_v31  ;;  %v563_v39 = vmax.f32 %v445_v32, 0.0  ;;  %v437_v40 = vadd.f32 %v1170_v18, %v436_v37  ;;  %v500_v41 = vpop.f32.mrf.mxu1 }
  0xd9   : > { %739 = vst.msk [vmem:[%s1180_s27 + $0x48] sm:$0xf] %vm720_vm2, %v951_v34  ;;  %v949_v42 = vpack.c.bf16 %v576_v35, %v576_v35  ;;  %v579_v43 = vmax.f32 %v509_v36, 0.0  ;;  %v501_v44 = vadd.f32 %v1170_v18, %v500_v41  ;;  %v990_v45 = vpop.f32.mrf.mxu0 }
  0xda   : > { %721 = vst.msk [vmem:[%s1180_s27] sm:$0xf] %vm720_vm2, %v933_v38  ;;  %v936_v46 = vpack.c.bf16 %v563_v39, %v563_v39  ;;  %v561_v47 = vmax.f32 %v437_v40, 0.0  ;;  %v458_v48 = vadd.f32 %v990_v45, %v1170_v18  ;;  %v1006_v49 = vpop.f32.mrf.mxu1 }
  0xdb   : > { %737 = vst.msk [vmem:[%s1180_s27 + $0x40] sm:$0xf] %vm720_vm2, %v949_v42  ;;  %v952_v50 = vpack.c.bf16 %v579_v43, %v579_v43  ;;  %v577_v51 = vmax.f32 %v501_v44, 0.0  ;;  %v522_v52 = vadd.f32 %v1006_v49, %v1170_v18  ;;  %v449_v53 = vpop.f32.mrf.mxu0 }
  0xdc   : > { %724 = vst.msk [vmem:[%s1180_s27 + $0xc] sm:$0xf] %vm720_vm2, %v936_v46  ;;  %v934_v54 = vpack.c.bf16 %v561_v47, %v561_v47  ;;  %v566_v55 = vmax.f32 %v458_v48, 0.0  ;;  %v450_v56 = vadd.f32 %v1170_v18, %v449_v53  ;;  %v513_v57 = vpop.f32.mrf.mxu1 }
  0xdd   : > { %740 = vst.msk [vmem:[%s1180_s27 + $0x4c] sm:$0xf] %vm720_vm2, %v952_v50  ;;  %v950_v58 = vpack.c.bf16 %v577_v51, %v577_v51  ;;  %v582_v59 = vmax.f32 %v522_v52, 0.0  ;;  %v514_v60 = vadd.f32 %v1170_v18, %v513_v57  ;;  %v991_v61 = vpop.f32.mrf.mxu0 }
  0xde   : > { %722 = vst.msk [vmem:[%s1180_s27 + $0x4] sm:$0xf] %vm720_vm2, %v934_v54  ;;  %v939_v62 = vpack.c.bf16 %v566_v55, %v566_v55  ;;  %v564_v63 = vmax.f32 %v450_v56, 0.0  ;;  %v461_v0 = vadd.f32 %v991_v61, %v1170_v18  ;;  %v1007_v1 = vpop.f32.mrf.mxu1 }
  0xdf   : > { %738 = vst.msk [vmem:[%s1180_s27 + $0x44] sm:$0xf] %vm720_vm2, %v950_v58  ;;  %v955_v2 = vpack.c.bf16 %v582_v59, %v582_v59  ;;  %v580_v3 = vmax.f32 %v514_v60, 0.0  ;;  %v525_v4 = vadd.f32 %v1007_v1, %v1170_v18  ;;  %v452_v5 = vpop.f32.mrf.mxu0 }
  0xe0   : > { %727 = vst.msk [vmem:[%s1180_s27 + $0x18] sm:$0xf] %vm720_vm2, %v939_v62  ;;  %v937_v6 = vpack.c.bf16 %v564_v63, %v564_v63  ;;  %v567_v7 = vmax.f32 %v461_v0, 0.0  ;;  %v453_v8 = vadd.f32 %v1170_v18, %v452_v5  ;;  %v516_v9 = vpop.f32.mrf.mxu1 }
  0xe1   : > { %743 = vst.msk [vmem:[%s1180_s27 + $0x58] sm:$0xf] %vm720_vm2, %v955_v2  ;;  %v953_v10 = vpack.c.bf16 %v580_v3, %v580_v3  ;;  %v583_v11 = vmax.f32 %v525_v4, 0.0  ;;  %v517_v12 = vadd.f32 %v1170_v18, %v516_v9  ;;  %v994_v13 = vpop.f32.mrf.mxu0 }
  0xe2   : > { %725 = vst.msk [vmem:[%s1180_s27 + $0x10] sm:$0xf] %vm720_vm2, %v937_v6  ;;  %v940_v14 = vpack.c.bf16 %v567_v7, %v567_v7  ;;  %v565_v15 = vmax.f32 %v453_v8, 0.0  ;;  %v474_v16 = vadd.f32 %v994_v13, %v1170_v18  ;;  %v1010_v17 = vpop.f32.mrf.mxu1 }
  0xe3   : > { %741 = vst.msk [vmem:[%s1180_s27 + $0x50] sm:$0xf] %vm720_vm2, %v953_v10  ;;  %v956_v19 = vpack.c.bf16 %v583_v11, %v583_v11  ;;  %v581_v20 = vmax.f32 %v517_v12, 0.0  ;;  %v538_v21 = vadd.f32 %v1010_v17, %v1170_v18  ;;  %v465_v22 = vpop.f32.mrf.mxu0 }
  0xe4   : > { %728 = vst.msk [vmem:[%s1180_s27 + $0x1c] sm:$0xf] %vm720_vm2, %v940_v14  ;;  %v938_v23 = vpack.c.bf16 %v565_v15, %v565_v15  ;;  %v570_v24 = vmax.f32 %v474_v16, 0.0  ;;  %v466_v25 = vadd.f32 %v1170_v18, %v465_v22  ;;  %v529_v26 = vpop.f32.mrf.mxu1 }
  0xe5   : > { %744 = vst.msk [vmem:[%s1180_s27 + $0x5c] sm:$0xf] %vm720_vm2, %v956_v19  ;;  %v954_v27 = vpack.c.bf16 %v581_v20, %v581_v20  ;;  %v586_v28 = vmax.f32 %v538_v21, 0.0  ;;  %v530_v29 = vadd.f32 %v1170_v18, %v529_v26  ;;  %v995_v30 = vpop.f32.mrf.mxu0 }
  0xe6   : > { %726 = vst.msk [vmem:[%s1180_s27 + $0x14] sm:$0xf] %vm720_vm2, %v938_v23  ;;  %v943_v31 = vpack.c.bf16 %v570_v24, %v570_v24  ;;  %v568_v32 = vmax.f32 %v466_v25, 0.0  ;;  %v477_v33 = vadd.f32 %v995_v30, %v1170_v18  ;;  %v1011_v34 = vpop.f32.mrf.mxu1 }
  0xe7   : > { %742 = vst.msk [vmem:[%s1180_s27 + $0x54] sm:$0xf] %vm720_vm2, %v954_v27  ;;  %v959_v35 = vpack.c.bf16 %v586_v28, %v586_v28  ;;  %v584_v36 = vmax.f32 %v530_v29, 0.0  ;;  %v541_v37 = vadd.f32 %v1011_v34, %v1170_v18  ;;  %v468_v38 = vpop.f32.mrf.mxu0 }
  0xe8   : > { %731 = vst.msk [vmem:[%s1180_s27 + $0x28] sm:$0xf] %vm720_vm2, %v943_v31  ;;  %v941_v39 = vpack.c.bf16 %v568_v32, %v568_v32  ;;  %v571_v40 = vmax.f32 %v477_v33, 0.0  ;;  %v469_v41 = vadd.f32 %v1170_v18, %v468_v38  ;;  %v532_v42 = vpop.f32.mrf.mxu1 }
  0xe9   : > { %747 = vst.msk [vmem:[%s1180_s27 + $0x68] sm:$0xf] %vm720_vm2, %v959_v35  ;;  %v957_v43 = vpack.c.bf16 %v584_v36, %v584_v36  ;;  %v587_v44 = vmax.f32 %v541_v37, 0.0  ;;  %v533_v45 = vadd.f32 %v1170_v18, %v532_v42  ;;  %v998_v46 = vpop.f32.mrf.mxu0 }
  0xea   : > { %729 = vst.msk [vmem:[%s1180_s27 + $0x20] sm:$0xf] %vm720_vm2, %v941_v39  ;;  %v944_v47 = vpack.c.bf16 %v571_v40, %v571_v40  ;;  %v569_v48 = vmax.f32 %v469_v41, 0.0  ;;  %v490_v49 = vadd.f32 %v998_v46, %v1170_v18  ;;  %v1014_v50 = vpop.f32.mrf.mxu1 }
  0xeb   : > { %745 = vst.msk [vmem:[%s1180_s27 + $0x60] sm:$0xf] %vm720_vm2, %v957_v43  ;;  %v960_v51 = vpack.c.bf16 %v587_v44, %v587_v44  ;;  %v585_v52 = vmax.f32 %v533_v45, 0.0  ;;  %v554_v53 = vadd.f32 %v1014_v50, %v1170_v18  ;;  %v481_v54 = vpop.f32.mrf.mxu0 }
  0xec   : > { %732 = vst.msk [vmem:[%s1180_s27 + $0x2c] sm:$0xf] %vm720_vm2, %v944_v47  ;;  %v942_v55 = vpack.c.bf16 %v569_v48, %v569_v48  ;;  %v574_v56 = vmax.f32 %v490_v49, 0.0  ;;  %v482_v57 = vadd.f32 %v1170_v18, %v481_v54  ;;  %v545_v58 = vpop.f32.mrf.mxu1 }
  0xed   : > { %748 = vst.msk [vmem:[%s1180_s27 + $0x6c] sm:$0xf] %vm720_vm2, %v960_v51  ;;  %v958_v59 = vpack.c.bf16 %v585_v52, %v585_v52  ;;  %v590_v60 = vmax.f32 %v554_v53, 0.0  ;;  %v546_v61 = vadd.f32 %v1170_v18, %v545_v58  ;;  %v999_v62 = vpop.f32.mrf.mxu0 }
  0xee   : > { %730 = vst.msk [vmem:[%s1180_s27 + $0x24] sm:$0xf] %vm720_vm2, %v942_v55  ;;  %v947_v63 = vpack.c.bf16 %v574_v56, %v574_v56  ;;  %v572_v0 = vmax.f32 %v482_v57, 0.0  ;;  %v493_v1 = vadd.f32 %v999_v62, %v1170_v18  ;;  %v1015_v2 = vpop.f32.mrf.mxu1 }
  0xef   : > { %746 = vst.msk [vmem:[%s1180_s27 + $0x64] sm:$0xf] %vm720_vm2, %v958_v59  ;;  %v963_v3 = vpack.c.bf16 %v590_v60, %v590_v60  ;;  %v588_v4 = vmax.f32 %v546_v61, 0.0  ;;  %v557_v5 = vadd.f32 %v1015_v2, %v1170_v18  ;;  %v484_v6 = vpop.f32.mrf.mxu0 }
  0xf0   : > { %735 = vst.msk [vmem:[%s1180_s27 + $0x38] sm:$0xf] %vm720_vm2, %v947_v63  ;;  %v945_v7 = vpack.c.bf16 %v572_v0, %v572_v0  ;;  %v575_v8 = vmax.f32 %v493_v1, 0.0  ;;  %v485_v9 = vadd.f32 %v1170_v18, %v484_v6  ;;  %v548_v10 = vpop.f32.mrf.mxu1 }
  0xf1   : > { %751 = vst.msk [vmem:[%s1180_s27 + $0x78] sm:$0xf] %vm720_vm2, %v963_v3  ;;  %v961_v11 = vpack.c.bf16 %v588_v4, %v588_v4  ;;  %v591_v12 = vmax.f32 %v557_v5, 0.0  ;;  %v549_v13 = vadd.f32 %v1170_v18, %v548_v10 }
  0xf2   : > { %733 = vst.msk [vmem:[%s1180_s27 + $0x30] sm:$0xf] %vm720_vm2, %v945_v7  ;;  %v948_v14 = vpack.c.bf16 %v575_v8, %v575_v8  ;;  %v573_v15 = vmax.f32 %v485_v9, 0.0 }
  0xf3   : > { %749 = vst.msk [vmem:[%s1180_s27 + $0x70] sm:$0xf] %vm720_vm2, %v961_v11  ;;  %v964_v16 = vpack.c.bf16 %v591_v12, %v591_v12  ;;  %v589_v17 = vmax.f32 %v549_v13, 0.0 }
  0xf4   : > { %736 = vst.msk [vmem:[%s1180_s27 + $0x3c] sm:$0xf] %vm720_vm2, %v948_v14  ;;  %v946_v19 = vpack.c.bf16 %v573_v15, %v573_v15 }
  0xf5   : > { %752 = vst.msk [vmem:[%s1180_s27 + $0x7c] sm:$0xf] %vm720_vm2, %v964_v16  ;;  %v962_v20 = vpack.c.bf16 %v589_v17, %v589_v17 }
  0xf6   : > { %734 = vst.msk [vmem:[%s1180_s27 + $0x34] sm:$0xf] %vm720_vm2, %v946_v19 }
  0xf7   : > { %750 = vst.msk [vmem:[%s1180_s27 + $0x74] sm:$0xf] %vm720_vm2, %v962_v20 }
  0xf8 PF: > { %s13_s14 = sadd.s32 1, %s1082_s14   ;;  %s1288_s12 = smov %s1078_s13 }
  0xf9   : > { %p10_p5 = scmp.ge.s32.totalorder %s13_s14, 4   ;;  %s1289_s13 = smov %s1291_s15 }
  0xfb   :  { %12 = sbr.rel (!%p10_p5) target bundleno = 2 (0x2), region = 68 }

</bundles_post_ra>
